<compile_context>
chip_gen: v7x
topology: tpu7x:2x2x1
jax: 0.10.0
libtpu: 0.0.40
codegen_flags: <defaults>
</compile_context>

<pallas_src>
import functools

import jax
import jax.numpy as jnp
from jax.experimental import pallas as pl
from jax.experimental.pallas import tpu as pltpu


def vq_kernel(x_ref, et_ref, e_ref, esq_ref, q_ref, idx_ref, sse_ref,
              *, n_valid, tn, need_mask):
    x = x_ref[...]                       # (tn, D) f32
    e_t = et_ref[...]                    # (D,  K) f32 (resident, pre-transposed)
    e = e_ref[...]                       # (K,  D) f32 (resident)
    e_sq = esq_ref[...]                  # (1,  K) f32 (resident, precomputed)
    K = e.shape[0]

    # squared L2 distances to every codebook entry
    x_sq = jnp.sum(x * x, axis=1, keepdims=True)                   # (tn, 1)  VPU/XLU
    xe = jnp.dot(x, e_t, preferred_element_type=jnp.float32)       # (tn, K)  MXU
    dist = x_sq + e_sq - 2.0 * xe                                  # (tn, K)

    # argmin along K (first occurrence, matching torch.argmin)
    min_d = jnp.min(dist, axis=1, keepdims=True)                   # (tn, 1)
    col = jax.lax.broadcasted_iota(jnp.int32, dist.shape, 1)       # (tn, K)
    idx_col = jnp.min(jnp.where(dist == min_d, col, K),
                      axis=1, keepdims=True)                       # (tn, 1)

    # one-hot @ E -> quantized rows (MXU matmul, same as PyTorch scatter+matmul)
    onehot = (col == idx_col).astype(jnp.float32)                  # (tn, K)
    q = jnp.dot(onehot, e, preferred_element_type=jnp.float32)     # (tn, D)

    q_ref[...] = q
    # lane-dense index store: one (1, 1, tn) row per tile (XLU relayout once,
    # instead of masked 1-lane stores every step).
    idx_ref[...] = idx_col.astype(jnp.int32).reshape(1, 1, tn)

    # fused partial SSE for the VQ loss (per-tile scalar; summed in wrapper).
    diff = q - x                                                   # (tn, D)
    sq = diff * diff
    if need_mask:
        row = (jax.lax.broadcasted_iota(jnp.int32, (tn, 1), 0)
               + pl.program_id(0) * tn)                            # (tn, 1)
        sq = jnp.where(row < n_valid, sq, 0.0)
    sse_ref[...] = jnp.sum(sq).reshape(1, 1, 1)


def vector_quantize(x_bhwd, embeddings, commitment_cost, tn=512):
    B, H, W, D = x_bhwd.shape
    N = B * H * W
    K = embeddings.shape[0]

    flat = x_bhwd.reshape(N, D).astype(jnp.float32)
    emb = embeddings.astype(jnp.float32)

    # Tile size: multiple of 8, capped so tiny inputs don't over-pad.
    tn = max(8, min(tn, ((N + 7) // 8) * 8))
    n_tiles = pl.cdiv(N, tn)
    Np = n_tiles * tn

    flat_p = flat if Np == N else jnp.pad(flat, ((0, Np - N), (0, 0)))

    # Hoisted codebook-derived terms (computed once, resident in VMEM).
    e_t = emb.T                                       # (D, K)
    e_sq = jnp.sum(emb * emb, axis=1)[None, :]        # (1, K)

    kernel = functools.partial(vq_kernel, n_valid=N, tn=tn, need_mask=(Np != N))

    q_flat, idx_tiles, sse_tiles = pl.pallas_call(
        kernel,
        out_shape=(
            jax.ShapeDtypeStruct((Np, D), jnp.float32),          # quantized (flat)
            jax.ShapeDtypeStruct((n_tiles, 1, tn), jnp.int32),   # lane-dense indices
            jax.ShapeDtypeStruct((n_tiles, 1, 1), jnp.float32),  # per-tile SSE
        ),
        grid_spec=pltpu.PrefetchScalarGridSpec(
            num_scalar_prefetch=0,
            grid=(n_tiles,),
            in_specs=[
                pl.BlockSpec((tn, D), lambda i: (i, 0)),   # row tile of inputs
                pl.BlockSpec((D, K), lambda i: (0, 0)),    # codebook^T, resident
                pl.BlockSpec((K, D), lambda i: (0, 0)),    # codebook, resident
                pl.BlockSpec((1, K), lambda i: (0, 0)),    # |e|^2, resident
            ],
            out_specs=[
                pl.BlockSpec((tn, D), lambda i: (i, 0)),
                pl.BlockSpec((1, 1, tn), lambda i: (i, 0, 0)),
                pl.BlockSpec((1, 1, 1), lambda i: (i, 0, 0)),
            ],
        ),
        compiler_params=pltpu.CompilerParams(
            dimension_semantics=("parallel",)),            # no cross-step state
        cost_estimate=pl.CostEstimate(
            flops=4 * Np * K * D + 3 * Np * D,             # 2 matmuls + SSE
            transcendentals=0,
            bytes_accessed=4 * (2 * Np * D + 2 * K * D + K + Np + n_tiles)),
    )(flat_p, e_t, emb, e_sq)

    q_flat = q_flat[:N]
    idx = idx_tiles.reshape(-1, 1)[:N]

    # Loss from fused per-tile SSE (detach only affects grads, so
    # q_latent_loss + c * e_latent_loss == (1 + c) * mse in forward value).
    mse = jnp.sum(sse_tiles) / (N * D)
    loss = (1.0 + commitment_cost) * mse

    # Straight-through estimator: forward value is simply `quantized`.
    quantized = q_flat.reshape(B, H, W, D)
    return quantized, loss, idx


def _reference(x_bhwd, embeddings, commitment_cost):
    """Pure-JAX reference mirroring the PyTorch forward (values only)."""
    B, H, W, D = x_bhwd.shape
    flat = x_bhwd.reshape(-1, D)
    dist = (jnp.sum(flat ** 2, axis=1, keepdims=True)
            + jnp.sum(embeddings ** 2, axis=1)[None, :]
            - 2.0 * flat @ embeddings.T)
    idx = jnp.argmin(dist, axis=1)
    q = embeddings[idx].reshape(B, H, W, D)
    mse = jnp.mean((q.reshape(-1, D) - flat) ** 2)
    loss = (1.0 + commitment_cost) * mse
    return q, loss, idx[:, None]


if __name__ == "__main__":
    # module config
    num_embeddings = 64
    embedding_dim = 32
    commitment_cost = 0.25

    # input: batch=2, spatial 8x8, channels-last with embedding_dim channels
    B, H, W, D = 2, 8, 8, embedding_dim

    key = jax.random.PRNGKey(0)
    k_emb, k_x = jax.random.split(key)

    # deterministic xavier_uniform init for the codebook (fan_in=D, fan_out=K)
    bound = (6.0 / (num_embeddings + embedding_dim)) ** 0.5
    embeddings = jax.random.uniform(
        k_emb, (num_embeddings, embedding_dim),
        minval=-bound, maxval=bound, dtype=jnp.float32)

    x = jax.random.normal(k_x, (B, H, W, D), dtype=jnp.float32)

    quantized, loss, idx = vector_quantize(x, embeddings, commitment_cost)
    jax.block_until_ready((quantized, loss, idx))

    assert quantized.shape == (B, H, W, D)
    assert idx.shape == (B * H * W, 1)
    assert loss.shape == ()

    # correctness check against the pure-JAX reference
    q_ref, loss_ref, idx_ref = _reference(x, embeddings, commitment_cost)
    assert jnp.allclose(quantized, q_ref, atol=1e-5, rtol=1e-5)
    assert jnp.allclose(loss, loss_ref, atol=1e-6, rtol=1e-5)
    assert jnp.array_equal(idx, idx_ref)

    print("KERNEL_OK")
</pallas_src>

<mosaic_0001>
module attributes {stable_mosaic.version = 11 : i64} {
  func.func @vq_kernel(%arg0: i32, %arg1: memref<128x32xf32, #tpu.memory_space<vmem>>, %arg2: memref<32x64xf32, #tpu.memory_space<vmem>>, %arg3: memref<64x32xf32, #tpu.memory_space<vmem>>, %arg4: memref<1x64xf32, #tpu.memory_space<vmem>>, %arg5: memref<128x32xf32, #tpu.memory_space<vmem>>, %arg6: memref<1x1x128xi32, #tpu.memory_space<vmem>>, %arg7: memref<1x1x1xf32, #tpu.memory_space<vmem>>) attributes {dimension_semantics = [#tpu.dimension_semantics<parallel>], iteration_bounds = array<i64: 1>, scalar_prefetch = 0 : i64, scratch_operands = 0 : i64, tpu.core_type = #tpu.core_type<tc>, window_params = [{transform_indices = @transform_0, window_bounds = array<i64: 128, 32>}, {pipeline_mode = #tpu.pipeline_mode<synchronous>, transform_indices = @transform_1, window_bounds = array<i64: 32, 64>}, {pipeline_mode = #tpu.pipeline_mode<synchronous>, transform_indices = @transform_2, window_bounds = array<i64: 64, 32>}, {pipeline_mode = #tpu.pipeline_mode<synchronous>, transform_indices = @transform_3, window_bounds = array<i64: 1, 64>}, {transform_indices = @transform_4, window_bounds = array<i64: 128, 32>}, {transform_indices = @transform_5, window_bounds = array<i64: 1, 1, 128>}, {transform_indices = @transform_6, window_bounds = array<i64: 1, 1, 1>}]} {
    %c0 = arith.constant 0 : index
    %c0_0 = arith.constant 0 : index
    %0 = vector.load %arg1[%c0, %c0_0] : memref<128x32xf32, #tpu.memory_space<vmem>>, vector<128x32xf32>
    %c0_1 = arith.constant 0 : index
    %c0_2 = arith.constant 0 : index
    %1 = vector.load %arg2[%c0_1, %c0_2] : memref<32x64xf32, #tpu.memory_space<vmem>>, vector<32x64xf32>
    %c0_3 = arith.constant 0 : index
    %c0_4 = arith.constant 0 : index
    %2 = vector.load %arg3[%c0_3, %c0_4] : memref<64x32xf32, #tpu.memory_space<vmem>>, vector<64x32xf32>
    %c0_5 = arith.constant 0 : index
    %c0_6 = arith.constant 0 : index
    %3 = vector.load %arg4[%c0_5, %c0_6] : memref<1x64xf32, #tpu.memory_space<vmem>>, vector<1x64xf32>
    %4 = arith.mulf %0, %0 : vector<128x32xf32>
    %cst = arith.constant dense<0.000000e+00> : vector<128xf32>
    %5 = vector.multi_reduction <add>, %4, %cst [1] : vector<128x32xf32> to vector<128xf32>
    %6 = vector.shape_cast %5 : vector<128xf32> to vector<128x1xf32>
    %cst_7 = arith.constant dense<0.000000e+00> : vector<128x64xf32>
    %7 = tpu.matmul %0, %1, %cst_7 {dimension_numbers = #tpu.dot_dimension_numbers<[1], [0], [0], [1], [0, 0, 1, 1], [], []>} : vector<128x32xf32>, vector<32x64xf32>, vector<128x64xf32> -> vector<128x64xf32>
    %8 = vector.broadcast %6 : vector<128x1xf32> to vector<128x64xf32>
    %9 = vector.broadcast %3 : vector<1x64xf32> to vector<128x64xf32>
    %10 = arith.addf %8, %9 : vector<128x64xf32>
    %cst_8 = arith.constant 2.000000e+00 : f32
    %11 = vector.broadcast %cst_8 : f32 to vector<128x64xf32>
    %12 = arith.mulf %11, %7 : vector<128x64xf32>
    %13 = arith.subf %10, %12 : vector<128x64xf32>
    %cst_9 = arith.constant dense<0x7F800000> : vector<128xf32>
    %14 = vector.multi_reduction <minimumf>, %13, %cst_9 [1] : vector<128x64xf32> to vector<128xf32>
    %15 = vector.shape_cast %14 : vector<128xf32> to vector<128x1xf32>
    %16 = tpu.iota {dimensions = array<i32: 1>} : vector<128x64xi32>
    %17 = vector.broadcast %15 : vector<128x1xf32> to vector<128x64xf32>
    %18 = arith.cmpf oeq, %13, %17 : vector<128x64xf32>
    %c64_i32 = arith.constant 64 : i32
    %19 = vector.broadcast %c64_i32 : i32 to vector<128x64xi32>
    %20 = arith.select %18, %16, %19 : vector<128x64xi1>, vector<128x64xi32>
    %cst_10 = arith.constant dense<2147483647> : vector<128xi32>
    %21 = vector.multi_reduction <minsi>, %20, %cst_10 [1] : vector<128x64xi32> to vector<128xi32>
    %22 = vector.shape_cast %21 : vector<128xi32> to vector<128x1xi32>
    %23 = vector.broadcast %22 : vector<128x1xi32> to vector<128x64xi32>
    %24 = arith.cmpi eq, %16, %23 : vector<128x64xi32>
    %25 = arith.extui %24 : vector<128x64xi1> to vector<128x64xi32>
    %26 = arith.sitofp %25 : vector<128x64xi32> to vector<128x64xf32>
    %cst_11 = arith.constant dense<0.000000e+00> : vector<128x32xf32>
    %27 = tpu.matmul %26, %2, %cst_11 {dimension_numbers = #tpu.dot_dimension_numbers<[1], [0], [0], [1], [0, 0, 1, 1], [], []>} : vector<128x64xf32>, vector<64x32xf32>, vector<128x32xf32> -> vector<128x32xf32>
    %c0_12 = arith.constant 0 : index
    %c0_13 = arith.constant 0 : index
    %28 = vector.load %arg5[%c0_12, %c0_13] : memref<128x32xf32, #tpu.memory_space<vmem>>, vector<128x32xf32>
    tpu.vector_store %arg5[%c0_12, %c0_13], %27 {strides = array<i32>} : memref<128x32xf32, #tpu.memory_space<vmem>>, vector<128x32xf32>,
    %29 = vector.shape_cast %22 : vector<128x1xi32> to vector<1x1x128xi32>
    %c0_14 = arith.constant 0 : index
    %c0_15 = arith.constant 0 : index
    %c0_16 = arith.constant 0 : index
    %30 = vector.load %arg6[%c0_14, %c0_15, %c0_16] : memref<1x1x128xi32, #tpu.memory_space<vmem>>, vector<1x1x128xi32>
    tpu.vector_store %arg6[%c0_14, %c0_15, %c0_16], %29 {strides = array<i32>} : memref<1x1x128xi32, #tpu.memory_space<vmem>>, vector<1x1x128xi32>,
    %31 = arith.subf %27, %0 : vector<128x32xf32>
    %32 = arith.mulf %31, %31 : vector<128x32xf32>
    %33 = vector.shape_cast %32 : vector<128x32xf32> to vector<1x128x32xf32>
    %cst_17 = arith.constant dense<0.000000e+00> : vector<1xf32>
    %34 = vector.multi_reduction <add>, %33, %cst_17 [1, 2] : vector<1x128x32xf32> to vector<1xf32>
    %35 = vector.shape_cast %34 : vector<1xf32> to vector<1x1x1xf32>
    %36 = vector.extract %35[0, 0, 0] : f32 from vector<1x1x1xf32>
    %37 = vector.broadcast %36 : f32 to vector<1x1x1xf32>
    %c0_18 = arith.constant 0 : index
    %c0_19 = arith.constant 0 : index
    %c0_20 = arith.constant 0 : index
    %38 = vector.load %arg7[%c0_18, %c0_19, %c0_20] : memref<1x1x1xf32, #tpu.memory_space<vmem>>, vector<1x1x1xf32>
    tpu.vector_store %arg7[%c0_18, %c0_19, %c0_20], %37 {strides = array<i32>} : memref<1x1x1xf32, #tpu.memory_space<vmem>>, vector<1x1x1xf32>,
    return
  }
  func.func @transform_0(%arg0: i32) -> (i32, i32) {
    %c0_i32 = arith.constant 0 : i32
    %c0_i32_0 = arith.constant 0 : i32
    return %arg0, %c0_i32 : i32, i32
  }
  func.func @transform_1(%arg0: i32) -> (i32, i32) {
    %c0_i32 = arith.constant 0 : i32
    %c0_i32_0 = arith.constant 0 : i32
    %c0_i32_1 = arith.constant 0 : i32
    return %c0_i32, %c0_i32_0 : i32, i32
  }
  func.func @transform_2(%arg0: i32) -> (i32, i32) {
    %c0_i32 = arith.constant 0 : i32
    %c0_i32_0 = arith.constant 0 : i32
    %c0_i32_1 = arith.constant 0 : i32
    return %c0_i32, %c0_i32_0 : i32, i32
  }
  func.func @transform_3(%arg0: i32) -> (i32, i32) {
    %c0_i32 = arith.constant 0 : i32
    %c0_i32_0 = arith.constant 0 : i32
    %c0_i32_1 = arith.constant 0 : i32
    return %c0_i32, %c0_i32_0 : i32, i32
  }
  func.func @transform_4(%arg0: i32) -> (i32, i32) {
    %c0_i32 = arith.constant 0 : i32
    %c0_i32_0 = arith.constant 0 : i32
    return %arg0, %c0_i32 : i32, i32
  }
  func.func @transform_5(%arg0: i32) -> (i32, i32, i32) {
    %c0_i32 = arith.constant 0 : i32
    %c0_i32_0 = arith.constant 0 : i32
    %c0_i32_1 = arith.constant 0 : i32
    return %arg0, %c0_i32, %c0_i32_0 : i32, i32, i32
  }
  func.func @transform_6(%arg0: i32) -> (i32, i32, i32) {
    %c0_i32 = arith.constant 0 : i32
    %c0_i32_0 = arith.constant 0 : i32
    %c0_i32_1 = arith.constant 0 : i32
    return %arg0, %c0_i32, %c0_i32_0 : i32, i32, i32
  }
}

</mosaic_0001>

<bundles_post_ra>
// kernel: tpu_custom_call.1
= control target key start
LH: loop header
LB: loop body
LE: loop exit
PB: predicated region body
PF: predicated region fallthrough
CT: control target
= control target key end

     0   :  { %12 = vsyncpa [#allocation3], 0  ;;  %vm67_vm0 = vcmask 261120   ;;  %s2208_s0 = inlined_call_operand.vmem [shape: f32[128,32], index: 0, kind: input, shape index: {}]   ;;  %s2209_s1 = inlined_call_operand.vmem [shape: f32[32,64], index: 1, kind: input, shape index: {}]   ;;  %s2210_s2 = inlined_call_operand.vmem [shape: f32[64,32], index: 2, kind: input, shape index: {}]   ;;  %s2211_s3 = inlined_call_operand.vmem [shape: f32[1,64], index: 3, kind: input, shape index: {}]   ;;  %s2212_s4 = inlined_call_operand.vmem [shape: f32[128,32], index: 4, kind: output, shape index: {0}]   ;;  %s2213_s5 = inlined_call_operand.hbm [shape: s32[1,1,128], index: 5, kind: output, shape index: {1}]   ;;  %s2214_s6 = inlined_call_operand.hbm [shape: f32[1,1,1], index: 6, kind: output, shape index: {2}]  }
   0x1   :  { %v38_v0 = vld [vmem:[%s2209_s1] sm:$0xff]  ;;  %v39_v1 = vld [vmem:[%s2209_s1 + $0x8] sm:$0xff]  ;;  %v40_v2 = vld [vmem:[%s2209_s1 + $0x10] sm:$0xff] }
   0x2   :  { %v1325_v3 = vpack.c.bf16 %v39_v1, %v38_v0  ;;  %v41_v4 = vld [vmem:[%s2209_s1 + $0x18] sm:$0xff]  ;;  %v22_v5 = vld [vmem:[%s2208_s0] sm:$0xff]  ;;  %v23_v6 = vld [vmem:[%s2208_s0 + $0x8] sm:$0xff] }
   0x3   :  { %v1329_v7 = vpack.c.bf16 %v41_v4, %v40_v2  ;;  %1261 = vmatprep.mubr.msk.f32.mxu0 %vm67_vm0, %v22_v5  ;;  %v24_v8 = vld [vmem:[%s2208_s0 + $0x10] sm:$0xff]  ;;  %v25_v9 = vld [vmem:[%s2208_s0 + $0x18] sm:$0xff]  ;;  %v51_v10 = vmul.f32 %v22_v5, %v22_v5  ;;  %v52_v11 = vmul.f32 %v23_v6, %v23_v6  ;;  %v26_v15 = vld [vmem:[%s2208_s0 + $0x20] sm:$0xff] }
   0x4   :  { %1326 = vmatprep.subr.bf16.mxu0 %v1325_v3  ;;  %v53_v12 = vmul.f32 %v24_v8, %v24_v8  ;;  %v54_v13 = vmul.f32 %v25_v9, %v25_v9  ;;  %v27_v17 = vld [vmem:[%s2208_s0 + $0x28] sm:$0xff]  ;;  %v55_v19 = vmul.f32 %v26_v15, %v26_v15 }
   0x5   :  { %1328 = vmatpush3.bf16.msra.mxu0 %v1325_v3  ;;  %v68_v14 = vsel %vm67_vm0, %v51_v10, 0.0  ;;  %v71_v18 = vsel %vm67_vm0, %v52_v11, 0.0  ;;  %v56_v21 = vmul.f32 %v27_v17, %v27_v17 }
   0x6   :  { %1330 = vmatprep.subr.bf16.mxu0 %v1329_v7  ;;  %69 = vadd.xlane.f32.xlu0 %v68_v14  ;;  %v74_v16 = vsel %vm67_vm0, %v53_v12, 0.0  ;;  %v77_v20 = vsel %vm67_vm0, %v54_v13, 0.0 }
   0x7   :  { %75 = vadd.xlane.f32.xlu1 %v74_v16 }
   0x8   :  { %13 = vsyncpa [#allocation5], 0  ;;  %v28_v22 = vld [vmem:[%s2208_s0 + $0x30] sm:$0xff]  ;;  %v29_v23 = vld [vmem:[%s2208_s0 + $0x38] sm:$0xff]  ;;  %v80_v24 = vsel %vm67_vm0, %v55_v19, 0.0  ;;  %v83_v26 = vsel %vm67_vm0, %v56_v21, 0.0 }
   0x9   :  { %1332 = vmatpush3.bf16.msra.mxu0 %v1329_v7  ;;  %v57_v25 = vmul.f32 %v28_v22, %v28_v22  ;;  %v58_v27 = vmul.f32 %v29_v23, %v29_v23  ;;  %v30_v28 = vld [vmem:[%s2208_s0 + $0x40] sm:$0xff]  ;;  %v31_v29 = vld [vmem:[%s2208_s0 + $0x48] sm:$0xff]  ;;  %v32_v34 = vld [vmem:[%s2208_s0 + $0x50] sm:$0xff]  ;;  %vm363_vm1 = vcmask 523264   ;;  %s1427_s1 = smov [#allocation2]  }
   0xa   :  { %72 = vadd.xlane.f32.xlu0 %v71_v18  ;;  %v59_v31 = vmul.f32 %v30_v28, %v30_v28  ;;  %v60_v33 = vmul.f32 %v31_v29, %v31_v29  ;;  %v33_v35 = vld [vmem:[%s2208_s0 + $0x58] sm:$0xff]  ;;  %v61_v37 = vmul.f32 %v32_v34, %v32_v34  ;;  %v34_v40 = vld [vmem:[%s2208_s0 + $0x60] sm:$0xff]  ;;  %v35_v41 = vld [vmem:[%s2208_s0 + $0x68] sm:$0xff] }
   0xb   :  { %78 = vadd.xlane.f32.xlu1 %v77_v20  ;;  %v86_v30 = vsel %vm67_vm0, %v57_v25, 0.0  ;;  %v89_v32 = vsel %vm67_vm0, %v58_v27, 0.0  ;;  %v62_v39 = vmul.f32 %v33_v35, %v33_v35  ;;  %v63_v43 = vmul.f32 %v34_v40, %v34_v40  ;;  %v36_v46 = vld [vmem:[%s2208_s0 + $0x70] sm:$0xff]  ;;  %v37_v47 = vld [vmem:[%s2208_s0 + $0x78] sm:$0xff]  ;;  %v1559_v60 = vld [vmem:[%s2211_s3] ss:$0 sm:$0xff] }
   0xc   :  { %1262 = vmatmul.mubr.msk.f32.vlgmr.msra.gmra.mrb[0].mxu0 %vm67_vm0, %v23_v6  ;;  %v92_v36 = vsel %vm67_vm0, %v59_v31, 0.0  ;;  %v95_v38 = vsel %vm67_vm0, %v60_v33, 0.0  ;;  %v98_v42 = vsel %vm67_vm0, %v61_v37, 0.0  ;;  %v64_v45 = vmul.f32 %v35_v41, %v35_v41 }
   0xd   :  { %1264 = vmatprep.mubr.msk.f32.mxu0 %vm67_vm0, %v24_v8  ;;  %v101_v44 = vsel %vm67_vm0, %v62_v39, 0.0  ;;  %v104_v48 = vsel %vm67_vm0, %v63_v43, 0.0  ;;  %v65_v49 = vmul.f32 %v36_v46, %v36_v46  ;;  %v66_v51 = vmul.f32 %v37_v47, %v37_v47 }
   0xe   :  { %81 = vadd.xlane.f32.xlu0 %v80_v24  ;;  %v107_v50 = vsel %vm67_vm0, %v64_v45, 0.0 }
   0xf   :  { %84 = vadd.xlane.f32.xlu1 %v83_v26  ;;  %v110_v52 = vsel %vm67_vm0, %v65_v49, 0.0  ;;  %v113_v53 = vsel %vm67_vm0, %v66_v51, 0.0 }
  0x10   :  { %1265 = vmatmul.mubr.msk.f32.gmra.mrb[2].mxu0 %vm67_vm0, %v25_v9 }
  0x11   :  { %1267 = vmatprep.mubr.msk.f32.mxu0 %vm67_vm0, %v26_v15 }
  0x12   :  { %87 = vadd.xlane.f32.xlu0 %v86_v30 }
  0x13   :  { %90 = vadd.xlane.f32.xlu1 %v89_v32 }
  0x14   :  { %1268 = vmatmul.mubr.msk.f32.gmra.mrb[4].mxu0 %vm67_vm0, %v27_v17 }
  0x15   :  { %1270 = vmatprep.mubr.msk.f32.mxu0 %vm67_vm0, %v28_v22 }
  0x16   :  { %93 = vadd.xlane.f32.xlu0 %v92_v36 }
  0x17   :  { %96 = vadd.xlane.f32.xlu1 %v95_v38 }
  0x18   :  { %1271 = vmatmul.mubr.msk.f32.gmra.mrb[6].mxu0 %vm67_vm0, %v29_v23 }
  0x19   :  { %1273 = vmatprep.mubr.msk.f32.mxu0 %vm67_vm0, %v30_v28 }
  0x1a   :  { %99 = vadd.xlane.f32.xlu0 %v98_v42 }
  0x1b   :  { %102 = vadd.xlane.f32.xlu1 %v101_v44 }
  0x1c   :  { %1274 = vmatmul.mubr.msk.f32.gmra.mrb[8].mxu0 %vm67_vm0, %v31_v29 }
  0x1d   :  { %1276 = vmatprep.mubr.msk.f32.mxu0 %vm67_vm0, %v32_v34 }
  0x1e   :  { %105 = vadd.xlane.f32.xlu0 %v104_v48 }
  0x1f   :  { %108 = vadd.xlane.f32.xlu1 %v107_v50 }
  0x20   :  { %1277 = vmatmul.mubr.msk.f32.gmra.mrb[10].mxu0 %vm67_vm0, %v33_v35 }
  0x21   :  { %1279 = vmatprep.mubr.msk.f32.mxu0 %vm67_vm0, %v34_v40 }
  0x22   :  { %111 = vadd.xlane.f32.xlu0 %v110_v52 }
  0x23   :  { %114 = vadd.xlane.f32.xlu1 %v113_v53 }
  0x24   :  { %1280 = vmatmul.mubr.msk.f32.gmra.mrb[12].mxu0 %vm67_vm0, %v35_v41 }
  0x25   :  { %1282 = vmatprep.mubr.msk.f32.mxu0 %vm67_vm0, %v36_v46 }
  0x28   :  { %1283 = vmatmul.mubr.msk.f32.gmra.mrb[14].mxu0 %vm67_vm0, %v37_v47 }
  0x93   :  { %v70_v55 = vpop.xlane.xlu0 %69 }
  0x94   :  { %v76_v54 = vpop.xlane.xlu1 %75  ;;  %v315_v3 = vadd.f32 %v1559_v60, %v70_v55 }
  0x95   :  { %v317_v12 = vadd.f32 %v1559_v60, %v76_v54 }
  0x97   :  { %v73_v57 = vpop.xlane.xlu0 %72 }
  0x98   :  { %v79_v56 = vpop.xlane.xlu1 %78  ;;  %v316_v61 = vadd.f32 %v1559_v60, %v73_v57 }
  0x99   :  { %v318_v5 = vadd.f32 %v1559_v60, %v79_v56 }
  0x9b   :  { %v82_v59 = vpop.xlane.xlu0 %81 }
  0x9c   :  { %v85_v58 = vpop.xlane.xlu1 %84  ;;  %v319_v20 = vadd.f32 %v1559_v60, %v82_v59 }
  0x9d   :  { %v320_v16 = vadd.f32 %v1559_v60, %v85_v58 }
  0x9f   :  { %v88_v2 = vpop.xlane.xlu0 %87 }
  0xa0   :  { %v91_v63 = vpop.xlane.xlu1 %90  ;;  %v321_v30 = vadd.f32 %v1559_v60, %v88_v2 }
  0xa1   :  { %v322_v27 = vadd.f32 %v1559_v60, %v91_v63 }
  0xa3   :  { %v94_v18 = vpop.xlane.xlu0 %93 }
  0xa4   :  { %v97_v15 = vpop.xlane.xlu1 %96  ;;  %v323_v42 = vadd.f32 %v1559_v60, %v94_v18 }
  0xa5   :  { %v324_v39 = vadd.f32 %v1559_v60, %v97_v15 }
  0xa7   :  { %v100_v36 = vpop.xlane.xlu0 %99 }
  0xa8   :  { %v103_v32 = vpop.xlane.xlu1 %102  ;;  %v325_v54 = vadd.f32 %v1559_v60, %v100_v36 }
  0xa9   :  { %v326_v50 = vadd.f32 %v1559_v60, %v103_v32 }
  0xab   :  { %v106_v52 = vpop.xlane.xlu0 %105 }
  0xac   :  { %v109_v49 = vpop.xlane.xlu1 %108 }
  0xdf   :  { %v1263_v62 = vpop.f32.mrb[0].mxu0 }
  0xe0   :  { %v332_v0 = vmul.f32 2.0, %v1263_v62  ;;  %v230_v1 = vpop.f32.mrb[1].mxu0  ;;  %v328_v62 = vadd.f32 %v1559_v60, %v109_v49 }
  0xe1   :  { %v331_v4 = vmul.f32 2.0, %v230_v1  ;;  %v327_v1 = vadd.f32 %v1559_v60, %v106_v52 }
  0xe2   :  { %v1564_v6 = vsub.f32 %v316_v61, %v332_v0 }
  0xe3   :  { %v1266_v7 = vpop.f32.mrb[2].mxu0  ;;  %v1566_v8 = vsub.f32 %v315_v3, %v331_v4  ;;  %v115_v3 = vpop.xlane.xlu1 %114 }
  0xe4   :  { %v334_v9 = vmul.f32 2.0, %v1266_v7  ;;  %v240_v10 = vpop.f32.mrb[3].mxu0  ;;  %v367_v11 = vsel %vm363_vm1, %v1564_v6, inf }
  0xe5   :  { %v333_v13 = vmul.f32 2.0, %v240_v10  ;;  %368 = vmin.xlane.f32.xlu1 %v367_v11  ;;  %v364_v14 = vsel %vm363_vm1, %v1566_v8, inf }
  0xe6   :  { %365 = vmin.xlane.f32.xlu0 %v364_v14  ;;  %v1574_v17 = vsub.f32 %v318_v5, %v334_v9  ;;  %v112_v9 = vpop.xlane.xlu0 %111 }
  0xe7   :  { %v1269_v19 = vpop.f32.mrb[4].mxu0  ;;  %v1577_v21 = vsub.f32 %v317_v12, %v333_v13  ;;  %v330_v12 = vadd.f32 %v1559_v60, %v115_v3  ;;  %v329_v15 = vadd.f32 %v1559_v60, %v112_v9 }
  0xe8   :  { %v336_v22 = vmul.f32 2.0, %v1269_v19  ;;  %v250_v23 = vpop.f32.mrb[5].mxu0  ;;  %v373_v24 = vsel %vm363_vm1, %v1574_v17, inf }
  0xe9   :  { %v335_v25 = vmul.f32 2.0, %v250_v23  ;;  %374 = vmin.xlane.f32.xlu1 %v373_v24  ;;  %v370_v26 = vsel %vm363_vm1, %v1577_v21, inf }
  0xea   :  { %371 = vmin.xlane.f32.xlu0 %v370_v26  ;;  %v1584_v28 = vsub.f32 %v320_v16, %v336_v22 }
  0xeb   :  { %v1272_v29 = vpop.f32.mrb[6].mxu0  ;;  %v1587_v31 = vsub.f32 %v319_v20, %v335_v25 }
  0xec   :  { %v338_v33 = vmul.f32 2.0, %v1272_v29  ;;  %v260_v34 = vpop.f32.mrb[7].mxu0  ;;  %v379_v35 = vsel %vm363_vm1, %v1584_v28, inf }
  0xed   :  { %v337_v37 = vmul.f32 2.0, %v260_v34  ;;  %380 = vmin.xlane.f32.xlu1 %v379_v35  ;;  %v376_v38 = vsel %vm363_vm1, %v1587_v31, inf }
  0xee   :  { %377 = vmin.xlane.f32.xlu0 %v376_v38  ;;  %v1594_v40 = vsub.f32 %v322_v27, %v338_v33  ;;  %v412_v27 = vlaneseq }
  0xef   :  { %v1275_v41 = vpop.f32.mrb[8].mxu0  ;;  %v1597_v43 = vsub.f32 %v321_v30, %v337_v37 }
  0xf0   :  { %v340_v44 = vmul.f32 2.0, %v1275_v41  ;;  %v270_v45 = vpop.f32.mrb[9].mxu0  ;;  %v385_v46 = vsel %vm363_vm1, %v1594_v40, inf  ;;  %v1642_v29 = vand.u32 127, %v412_v27 }
  0xf1   :  { %v339_v47 = vmul.f32 2.0, %v270_v45  ;;  %386 = vmin.xlane.f32.xlu1 %v385_v46  ;;  %v382_v48 = vsel %vm363_vm1, %v1597_v43, inf }
  0xf2   :  { %383 = vmin.xlane.f32.xlu0 %v382_v48  ;;  %v1604_v51 = vsub.f32 %v324_v39, %v340_v44 }
  0xf3   :  { %v1278_v53 = vpop.f32.mrb[10].mxu0  ;;  %v1607_v55 = vsub.f32 %v323_v42, %v339_v47 }
  0xf4   :  { %v342_v56 = vmul.f32 2.0, %v1278_v53  ;;  %v280_v57 = vpop.f32.mrb[11].mxu0  ;;  %v391_v58 = vsel %vm363_vm1, %v1604_v51, inf }
  0xf5   :  { %v341_v59 = vmul.f32 2.0, %v280_v57  ;;  %392 = vmin.xlane.f32.xlu1 %v391_v58  ;;  %v388_v61 = vsel %vm363_vm1, %v1607_v55, inf }
  0xf6   :  { %389 = vmin.xlane.f32.xlu0 %v388_v61  ;;  %v1614_v63 = vsub.f32 %v326_v50, %v342_v56 }
  0xf7   :  { %v1281_v0 = vpop.f32.mrb[12].mxu0  ;;  %v1617_v2 = vsub.f32 %v325_v54, %v341_v59 }
  0xf8   :  { %v344_v4 = vmul.f32 2.0, %v1281_v0  ;;  %v290_v5 = vpop.f32.mrb[13].mxu0  ;;  %v397_v7 = vsel %vm363_vm1, %v1614_v63, inf }
  0xf9   :  { %v343_v10 = vmul.f32 2.0, %v290_v5  ;;  %398 = vmin.xlane.f32.xlu1 %v397_v7  ;;  %v394_v11 = vsel %vm363_vm1, %v1617_v2, inf }
  0xfa   :  { %395 = vmin.xlane.f32.xlu0 %v394_v11  ;;  %v1624_v13 = vsub.f32 %v328_v62, %v344_v4 }
  0xfb   :  { %v1284_v14 = vpop.f32.mrb[14].mxu0  ;;  %v1627_v16 = vsub.f32 %v327_v1, %v343_v10 }
  0xfc   :  { %v346_v18 = vmul.f32 2.0, %v1284_v14  ;;  %v300_v19 = vpop.f32.mrb[15].mxu0  ;;  %v403_v20 = vsel %vm363_vm1, %v1624_v13, inf }
  0xfd   :  { %v345_v22 = vmul.f32 2.0, %v300_v19  ;;  %404 = vmin.xlane.f32.xlu1 %v403_v20  ;;  %v400_v23 = vsel %vm363_vm1, %v1627_v16, inf }
  0xfe   :  { %401 = vmin.xlane.f32.xlu0 %v400_v23  ;;  %v1633_v24 = vsub.f32 %v330_v12, %v346_v18 }
  0xff   :  { %v1635_v25 = vsub.f32 %v329_v15, %v345_v22 }
 0x100   :  { %v409_v60 = vsel %vm363_vm1, %v1633_v24, inf }
 0x101   :  { %410 = vmin.xlane.f32.xlu1 %v409_v60  ;;  %v406_v26 = vsel %vm363_vm1, %v1635_v25, inf }
 0x102   :  { %407 = vmin.xlane.f32.xlu0 %v406_v26 }
 0x172   :  { %v369_v30 = vpop.xlane.xlu1 %368 }
 0x173   :  { %vm415_vm2 = vcmp.eq.f32.partialorder %v1564_v6, %v369_v30  ;;  %v366_v32 = vpop.xlane.xlu0 %365 }
 0x174   :  { %v431_v33 = vsel %vm415_vm2, %v1642_v29, 64  ;;  %vm414_vm3 = vcmp.eq.f32.partialorder %v1566_v8, %v366_v32 }
 0x175   :  { %v1648_v34 = vsel %vm363_vm1, %v431_v33, 2147483647  ;;  %v430_v35 = vsel %vm414_vm3, %v1642_v29, 64 }
 0x176   :  { %v1652_v36 = vsel %vm363_vm1, %v430_v35, 2147483647  ;;  %v375_v37 = vpop.xlane.xlu1 %374  ;;  %v463_v38 = vshra.s32 %v1648_v34, 16 }
 0x177   :  { %vm417_vm4 = vcmp.eq.f32.partialorder %v1574_v17, %v375_v37  ;;  %v372_v39 = vpop.xlane.xlu0 %371  ;;  %v448_v6 = vshra.s32 %v1652_v36, 16 }
 0x178   :  { %v433_v41 = vsel %vm417_vm4, %v1642_v29, 64  ;;  %vm416_vm5 = vcmp.eq.f32.partialorder %v1577_v21, %v372_v39  ;;  %v1659_v8 = vcvt.s32.f32 %v463_v38 }
 0x179   :  { %v1662_v42 = vsel %vm363_vm1, %v433_v41, 2147483647  ;;  %v432_v44 = vsel %vm416_vm5, %v1642_v29, 64  ;;  %v1665_v45 = vcvt.s32.f32 %v448_v6 }
 0x17a   :  { %v1668_v46 = vsel %vm363_vm1, %v432_v44, 2147483647  ;;  %466 = vmin.xlane.f32.xlu1 %v1659_v8  ;;  %v381_v17 = vpop.xlane.xlu1 %380  ;;  %v493_v47 = vshra.s32 %v1662_v42, 16 }
 0x17b   :  { %vm419_vm6 = vcmp.eq.f32.partialorder %v1584_v28, %v381_v17  ;;  %451 = vmin.xlane.f32.xlu0 %v1665_v45  ;;  %v378_v21 = vpop.xlane.xlu0 %377  ;;  %v478_v48 = vshra.s32 %v1668_v46, 16 }
 0x17c   :  { %v435_v49 = vsel %vm419_vm6, %v1642_v29, 64  ;;  %vm418_vm7 = vcmp.eq.f32.partialorder %v1587_v31, %v378_v21  ;;  %v1677_v50 = vcvt.s32.f32 %v493_v47 }
 0x17d   :  { %v1680_v52 = vsel %vm363_vm1, %v435_v49, 2147483647  ;;  %v434_v53 = vsel %vm418_vm7, %v1642_v29, 64  ;;  %v1683_v54 = vcvt.s32.f32 %v478_v48 }
 0x17e   :  { %v1686_v28 = vsel %vm363_vm1, %v434_v53, 2147483647  ;;  %496 = vmin.xlane.f32.xlu1 %v1677_v50  ;;  %v387_v56 = vpop.xlane.xlu1 %386  ;;  %v523_v57 = vshra.s32 %v1680_v52, 16 }
 0x17f   :  { %vm421_vm8 = vcmp.eq.f32.partialorder %v1594_v40, %v387_v56  ;;  %481 = vmin.xlane.f32.xlu0 %v1683_v54  ;;  %v384_v31 = vpop.xlane.xlu0 %383  ;;  %v508_v58 = vshra.s32 %v1686_v28, 16 }
 0x180   :  { %v437_v59 = vsel %vm421_vm8, %v1642_v29, 64  ;;  %vm420_vm9 = vcmp.eq.f32.partialorder %v1597_v43, %v384_v31  ;;  %v1695_v61 = vcvt.s32.f32 %v523_v57  ;;  %v42_v31 = vld [vmem:[%s2210_s2] sm:$0xff] }
 0x181   :  { %v1698_v62 = vsel %vm363_vm1, %v437_v59, 2147483647  ;;  %v436_v0 = vsel %vm420_vm9, %v1642_v29, 64  ;;  %v1701_v1 = vcvt.s32.f32 %v508_v58  ;;  %v43_v58 = vld [vmem:[%s2210_s2 + $0x8] sm:$0xff]  ;;  %v44_v59 = vld [vmem:[%s2210_s2 + $0x10] sm:$0xff] }
 0x182   :  { %v1704_v40 = vsel %vm363_vm1, %v436_v0, 2147483647  ;;  %526 = vmin.xlane.f32.xlu1 %v1695_v61  ;;  %v393_v3 = vpop.xlane.xlu1 %392  ;;  %v553_v4 = vshra.s32 %v1698_v62, 16  ;;  %v1333_v0 = vpack.c.bf16 %v43_v58, %v42_v31 }
 0x183   :  { %vm423_vm10 = vcmp.eq.f32.partialorder %v1604_v51, %v393_v3  ;;  %511 = vmin.xlane.f32.xlu0 %v1701_v1  ;;  %v390_v43 = vpop.xlane.xlu0 %389  ;;  %v538_v5 = vshra.s32 %v1704_v40, 16  ;;  %v45_v3 = vld [vmem:[%s2210_s2 + $0x18] sm:$0xff] }
 0x184   :  { %v439_v7 = vsel %vm423_vm10, %v1642_v29, 64  ;;  %vm422_vm11 = vcmp.eq.f32.partialorder %v1607_v55, %v390_v43  ;;  %v1713_v9 = vcvt.s32.f32 %v553_v4  ;;  %v1337_v4 = vpack.c.bf16 %v45_v3, %v44_v59  ;;  %v46_v43 = vld [vmem:[%s2210_s2 + $0x20] sm:$0xff]  ;;  %1334 = vmatprep.subr.bf16.mxu0 %v1333_v0  ;;  %1349 = vmatprep.subr.bf16.mxu1 %v1333_v0 }
 0x185   :  { %v1716_v10 = vsel %vm363_vm1, %v439_v7, 2147483647  ;;  %v438_v11 = vsel %vm422_vm11, %v1642_v29, 64  ;;  %v1719_v12 = vcvt.s32.f32 %v538_v5  ;;  %v47_v5 = vld [vmem:[%s2210_s2 + $0x28] sm:$0xff]  ;;  %1336 = vmatpush3.bf16.msra.mxu0 %v1333_v0  ;;  %1353 = vmatpush3.bf16.msra.mxu1 %v1333_v0 }
 0x186   :  { %v1722_v51 = vsel %vm363_vm1, %v438_v11, 2147483647  ;;  %556 = vmin.xlane.f32.xlu1 %v1713_v9  ;;  %v399_v14 = vpop.xlane.xlu1 %398  ;;  %v583_v15 = vshra.s32 %v1716_v10, 16  ;;  %1338 = vmatprep.subr.bf16.mxu0 %v1337_v4  ;;  %v1341_v7 = vpack.c.bf16 %v47_v5, %v46_v43  ;;  %v462_v11 = vand.u32 65535, %v1648_v34 }
 0x187   :  { %vm425_vm12 = vcmp.eq.f32.partialorder %v1614_v63, %v399_v14  ;;  %541 = vmin.xlane.f32.xlu0 %v1719_v12  ;;  %v396_v55 = vpop.xlane.xlu0 %395  ;;  %v568_v18 = vshra.s32 %v1722_v51, 16  ;;  %1350 = vmatprep.subr.bf16.mxu1 %v1337_v4  ;;  %v447_v14 = vand.u32 65535, %v1652_v36 }
 0x188   :  { %v441_v19 = vsel %vm425_vm12, %v1642_v29, 64  ;;  %vm424_vm13 = vcmp.eq.f32.partialorder %v1617_v2, %v396_v55  ;;  %v1731_v20 = vcvt.s32.f32 %v583_v15  ;;  %v464_v55 = vcvt.s32.f32 %v462_v11 }
 0x189   :  { %v1734_v22 = vsel %vm363_vm1, %v441_v19, 2147483647  ;;  %v440_v23 = vsel %vm424_vm13, %v1642_v29, 64  ;;  %v1737_v60 = vcvt.s32.f32 %v568_v18  ;;  %1340 = vmatpush3.bf16.msra.mxu0 %v1337_v4  ;;  %1354 = vmatpush3.bf16.msra.mxu1 %v1337_v4  ;;  %v492_v18 = vand.u32 65535, %v1662_v42 }
 0x18a   :  { %v1740_v63 = vsel %vm363_vm1, %v440_v23, 2147483647  ;;  %586 = vmin.xlane.f32.xlu1 %v1731_v20  ;;  %v405_v26 = vpop.xlane.xlu1 %404  ;;  %v613_v30 = vshra.s32 %v1734_v22, 16  ;;  %1342 = vmatprep.subr.bf16.mxu0 %v1341_v7  ;;  %v449_v23 = vcvt.s32.f32 %v447_v14  ;;  %v522_v42 = vand.u32 65535, %v1680_v52 }
 0x18b   :  { %vm427_vm14 = vcmp.eq.f32.partialorder %v1624_v13, %v405_v26  ;;  %571 = vmin.xlane.f32.xlu0 %v1737_v60  ;;  %v402_v2 = vpop.xlane.xlu0 %401  ;;  %v598_v32 = vshra.s32 %v1740_v63, 16  ;;  %1351 = vmatprep.subr.bf16.mxu1 %v1341_v7  ;;  %v477_v26 = vand.u32 65535, %v1668_v46  ;;  %v507_v46 = vand.u32 65535, %v1686_v28 }
 0x18c   :  { %v443_v33 = vsel %vm427_vm14, %v1642_v29, 64  ;;  %vm426_vm15 = vcmp.eq.f32.partialorder %v1627_v16, %v402_v2  ;;  %v1749_v35 = vcvt.s32.f32 %v613_v30  ;;  %v494_v2 = vcvt.s32.f32 %v492_v18 }
 0x18d   :  { %v1752_v37 = vsel %vm363_vm1, %v443_v33, 2147483647  ;;  %v442_v38 = vsel %vm426_vm15, %v1642_v29, 64  ;;  %v1755_v39 = vcvt.s32.f32 %v598_v32  ;;  %1344 = vmatpush3.bf16.msra.mxu0 %v1341_v7  ;;  %1355 = vmatpush3.bf16.msra.mxu1 %v1341_v7  ;;  %v552_v52 = vand.u32 65535, %v1698_v62 }
 0x18e   :  { %v1758_v13 = vsel %vm363_vm1, %v442_v38, 2147483647  ;;  %616 = vmin.xlane.f32.xlu1 %v1749_v35  ;;  %v411_v6 = vpop.xlane.xlu1 %410  ;;  %v643_v41 = vshra.s32 %v1752_v37, 16  ;;  %v537_v28 = vand.u32 65535, %v1704_v40  ;;  %v582_v62 = vand.u32 65535, %v1716_v10 }
 0x18f   :  { %vm429_vm2 = vcmp.eq.f32.partialorder %v1633_v24, %v411_v6  ;;  %601 = vmin.xlane.f32.xlu0 %v1755_v39  ;;  %v408_v16 = vpop.xlane.xlu0 %407  ;;  %v628_v44 = vshra.s32 %v1758_v13, 16  ;;  %v524_v6 = vcvt.s32.f32 %v522_v42  ;;  %v567_v40 = vand.u32 65535, %v1722_v51 }
 0x190   :  { %v445_v17 = vsel %vm429_vm2, %v1642_v29, 64  ;;  %vm428_vm3 = vcmp.eq.f32.partialorder %v1635_v25, %v408_v16  ;;  %v1767_v47 = vcvt.s32.f32 %v643_v41  ;;  %v584_v31 = vcvt.s32.f32 %v582_v62 }
 0x191   :  { %v1770_v21 = vsel %vm363_vm1, %v445_v17, 2147483647  ;;  %v444_v48 = vsel %vm428_vm3, %v1642_v29, 64  ;;  %v1773_v49 = vcvt.s32.f32 %v628_v44  ;;  %v554_v17 = vcvt.s32.f32 %v552_v52 }
 0x192   :  { %v1776_v24 = vsel %vm363_vm1, %v444_v48, 2147483647  ;;  %646 = vmin.xlane.f32.xlu1 %v1767_v47  ;;  %v673_v53 = vshra.s32 %v1770_v21, 16  ;;  %v612_v10 = vand.u32 65535, %v1734_v22  ;;  %v597_v51 = vand.u32 65535, %v1740_v63  ;;  %v49_v22 = vld [vmem:[%s2210_s2 + $0x38] sm:$0xff] }
 0x193   :  { %631 = vmin.xlane.f32.xlu0 %v1773_v49  ;;  %v658_v25 = vshra.s32 %v1776_v24, 16  ;;  %v642_v63 = vand.u32 65535, %v1752_v37  ;;  %v627_v5 = vand.u32 65535, %v1758_v13  ;;  %v657_v18 = vand.u32 65535, %v1776_v24 }
 0x194   :  { %v1782_v56 = vcvt.s32.f32 %v673_v53  ;;  %v1892_v42 = vshrl.u32 %v412_v27, 7 }
 0x195   :  { %v1784_v57 = vcvt.s32.f32 %v658_v25  ;;  %v644_v37 = vcvt.s32.f32 %v642_v63  ;;  %v629_v13 = vcvt.s32.f32 %v627_v5  ;;  %v1947_v5 = vadd.s32 4294967240, %v1642_v29 }
 0x196   :  { %676 = vmin.xlane.f32.xlu1 %v1782_v56 }
 0x197   :  { %661 = vmin.xlane.f32.xlu0 %v1784_v57 }
 0x207   :  { %v1808_v15 = vpop.xlane.xlu1 %466 }
 0x208   :  { %v1811_v19 = vpop.xlane.xlu0 %451  ;;  %vm468_vm4 = vcmp.eq.f32.partialorder %v1659_v8, %v1808_v15  ;;  %v479_v8 = vcvt.s32.f32 %v477_v26  ;;  %v473_v24 = vcvt.f32.s32 %v1808_v15 }
 0x209   :  { %v469_v30 = vsel %vm468_vm4, %v464_v55, inf  ;;  %vm453_vm5 = vcmp.eq.f32.partialorder %v1665_v45, %v1811_v19  ;;  %v672_v55 = vand.u32 65535, %v1770_v21  ;;  %v659_v21 = vcvt.s32.f32 %v657_v18 }
 0x20a   :  { %470 = vmin.xlane.f32.xlu1 %v469_v30  ;;  %v454_v34 = vsel %vm453_vm5, %v449_v23, inf  ;;  %v1955_v18 = vadd.s32 4294967248, %v1642_v29 }
 0x20b   :  { %v1818_v36 = vpop.xlane.xlu1 %496  ;;  %455 = vmin.xlane.f32.xlu0 %v454_v34  ;;  %v674_v30 = vcvt.s32.f32 %v672_v55 }
 0x20c   :  { %v1821_v32 = vpop.xlane.xlu0 %481  ;;  %vm498_vm6 = vcmp.eq.f32.partialorder %v1677_v50, %v1818_v36  ;;  %v509_v50 = vcvt.s32.f32 %v507_v46  ;;  %v503_v46 = vcvt.f32.s32 %v1818_v36 }
 0x20d   :  { %v499_v33 = vsel %vm498_vm6, %v494_v2, inf  ;;  %vm483_vm7 = vcmp.eq.f32.partialorder %v1683_v54, %v1821_v32  ;;  %vm952_vm6 = vcmask 130112  }
 0x20e   :  { %500 = vmin.xlane.f32.xlu1 %v499_v33  ;;  %v484_v45 = vsel %vm483_vm7, %v479_v8, inf  ;;  %v947_v8 = vadd.s32 4294967288, %v1642_v29  ;;  %vm959_vm7 = vcmask 195712  }
 0x20f   :  { %v1828_v38 = vpop.xlane.xlu1 %526  ;;  %485 = vmin.xlane.f32.xlu0 %v484_v45 }
 0x210   :  { %v1831_v41 = vpop.xlane.xlu0 %511  ;;  %vm528_vm8 = vcmp.eq.f32.partialorder %v1695_v61, %v1828_v38  ;;  %v539_v61 = vcvt.s32.f32 %v537_v28  ;;  %v533_v33 = vcvt.f32.s32 %v1828_v38  ;;  %v504_v28 = vshll.u32 %v503_v46, 16 }
 0x211   :  { %v529_v16 = vsel %vm528_vm8, %v524_v6, inf  ;;  %vm513_vm9 = vcmp.eq.f32.partialorder %v1701_v1, %v1831_v41  ;;  %vm966_vm8 = vcmask 261312  }
 0x212   :  { %530 = vmin.xlane.f32.xlu1 %v529_v16  ;;  %v514_v54 = vsel %vm513_vm9, %v509_v50, inf  ;;  %v950_v50 = vsub.s32 %v947_v8, %v1892_v42  ;;  %v1904_v16 = vshll.u32 %v533_v33, 16 }
 0x213   :  { %v1838_v44 = vpop.xlane.xlu1 %556  ;;  %515 = vmin.xlane.f32.xlu0 %v514_v54  ;;  %v1911_v54 = vadd.s32 4294967272, %v1642_v29 }
 0x214   :  { %v1841_v48 = vpop.xlane.xlu0 %541  ;;  %vm558_vm10 = vcmp.eq.f32.partialorder %v1713_v9, %v1838_v44  ;;  %v569_v9 = vcvt.s32.f32 %v567_v40  ;;  %v563_v45 = vcvt.f32.s32 %v1838_v44  ;;  %v954_v44 = vadd.s32 4294967280, %v1642_v29 }
 0x215   :  { %v559_v53 = vsel %vm558_vm10, %v554_v17, inf  ;;  %vm543_vm11 = vcmp.eq.f32.partialorder %v1719_v12, %v1841_v48  ;;  %v48_v12 = vld [vmem:[%s2210_s2 + $0x30] sm:$0xff]  ;;  %v548_v6 = vcvt.f32.s32 %v1841_v48  ;;  %vm973_vm10 = vcmask 326912  }
 0x216   :  { %560 = vmin.xlane.f32.xlu1 %v559_v53  ;;  %v544_v1 = vsel %vm543_vm11, %v539_v61, inf  ;;  %v1345_v3 = vpack.c.bf16 %v49_v22, %v48_v12  ;;  %v1914_v17 = vshll.u32 %v563_v45, 16  ;;  %v964_v22 = vsub.s32 %v1911_v54, %v1892_v42 }
 0x217   :  { %v1848_v25 = vpop.xlane.xlu1 %586  ;;  %545 = vmin.xlane.f32.xlu0 %v544_v1  ;;  %v1916_v62 = vshll.u32 %v548_v6, 16  ;;  %v945_v1 = vsub.s32 %v1642_v29, %v1892_v42 }
 0x218   :  { %v1851_v58 = vpop.xlane.xlu0 %571  ;;  %vm588_vm12 = vcmp.eq.f32.partialorder %v1731_v20, %v1848_v25  ;;  %v614_v20 = vcvt.s32.f32 %v612_v10  ;;  %1346 = vmatprep.subr.bf16.mxu0 %v1345_v3  ;;  %1352 = vmatprep.subr.bf16.mxu1 %v1345_v3  ;;  %v593_v15 = vcvt.f32.s32 %v1848_v25  ;;  %v1927_v25 = vadd.s32 4294967256, %v1642_v29 }
 0x219   :  { %v589_v59 = vsel %vm588_vm12, %v584_v31, inf  ;;  %vm573_vm13 = vcmp.eq.f32.partialorder %v1737_v60, %v1851_v58  ;;  %v599_v60 = vcvt.s32.f32 %v597_v51  ;;  %1348 = vmatpush3.bf16.msra.mxu0 %v1345_v3  ;;  %1356 = vmatpush3.bf16.msra.mxu1 %v1345_v3  ;;  %v578_v27 = vcvt.f32.s32 %v1851_v58 }
 0x21a   :  { %590 = vmin.xlane.f32.xlu1 %v589_v59  ;;  %v574_v0 = vsel %vm573_vm13, %v569_v9, inf  ;;  %v1918_v48 = vshll.u32 %v593_v15, 16  ;;  %v1932_v9 = vadd.s32 4294967264, %v1642_v29  ;;  %vm980_vm12 = vcmask 392512  }
 0x21b   :  { %v1864_v4 = vpop.xlane.xlu1 %616  ;;  %575 = vmin.xlane.f32.xlu0 %v574_v0  ;;  %v1921_v40 = vshll.u32 %v578_v27, 16  ;;  %v957_v0 = vsub.s32 %v954_v44, %v1892_v42  ;;  %v996_v15 = vadd.s32 4294967232, %v1642_v29 }
 0x21c   :  { %v1867_v43 = vpop.xlane.xlu0 %601  ;;  %vm618_vm14 = vcmp.eq.f32.partialorder %v1749_v35, %v1864_v4 }
 0x21d   :  { %v619_v7 = vsel %vm618_vm14, %v614_v20, inf  ;;  %vm603_vm15 = vcmp.eq.f32.partialorder %v1755_v39, %v1867_v43  ;;  %vm987_vm14 = vcmask 458112  }
 0x21e   :  { %620 = vmin.xlane.f32.xlu1 %v619_v7  ;;  %v604_v11 = vsel %vm603_vm15, %v599_v60, inf  ;;  %v978_v60 = vsub.s32 %v1927_v25, %v1892_v42 }
 0x21f   :  { %v1874_v14 = vpop.xlane.xlu1 %646  ;;  %605 = vmin.xlane.f32.xlu0 %v604_v11 }
 0x220   :  { %v1877_v35 = vpop.xlane.xlu0 %631  ;;  %vm648_vm2 = vcmp.eq.f32.partialorder %v1767_v47, %v1874_v14  ;;  %v653_v61 = vcvt.f32.s32 %v1874_v14 }
 0x221   :  { %v649_v23 = vsel %vm648_vm2, %v644_v37, inf  ;;  %vm633_vm3 = vcmp.eq.f32.partialorder %v1773_v49, %v1877_v35  ;;  %v458_v49 = vcvt.f32.s32 %v1811_v19  ;;  %v474_v19 = vshll.u32 %v473_v24, 16 }
 0x222   :  { %650 = vmin.xlane.f32.xlu1 %v649_v23  ;;  %v634_v39 = vsel %vm633_vm3, %v629_v13, inf  ;;  %v638_v53 = vcvt.f32.s32 %v1877_v35  ;;  %v1939_v3 = vshll.u32 %v653_v61, 16  ;;  %v971_v37 = vsub.s32 %v1932_v9, %v1892_v42 }
 0x223   :  { %v677_v26 = vpop.xlane.xlu1 %676  ;;  %635 = vmin.xlane.f32.xlu0 %v634_v39  ;;  %v459_v52 = vshll.u32 %v458_v49, 16  ;;  %vm994_vm2 = vcmask 523712   ;;  %v1987_v61 = vadd.s32 4294967208, %v1642_v29 }
 0x224   :  { %v1884_v34 = vpop.xlane.xlu0 %661  ;;  %vm678_vm4 = vcmp.eq.f32.partialorder %v1782_v56, %v677_v26  ;;  %v488_v56 = vcvt.f32.s32 %v1821_v32  ;;  %v623_v32 = vcvt.f32.s32 %v1864_v4  ;;  %v683_v10 = vcvt.f32.s32 %v677_v26 }
 0x225   :  { %v679_v2 = vsel %vm678_vm4, %v674_v30, inf  ;;  %vm663_vm5 = vcmp.eq.f32.partialorder %v1784_v57, %v1884_v34  ;;  %v518_v57 = vcvt.f32.s32 %v1831_v41  ;;  %v608_v41 = vcvt.f32.s32 %v1867_v43 }
 0x226   :  { %680 = vmin.xlane.f32.xlu1 %v679_v2  ;;  %v664_v47 = vsel %vm663_vm5, %v659_v21, inf  ;;  %v489_v36 = vshll.u32 %v488_v56, 16  ;;  %v1929_v31 = vshll.u32 %v623_v32, 16  ;;  %v668_v4 = vcvt.f32.s32 %v1884_v34 }
 0x227   :  { %665 = vmin.xlane.f32.xlu0 %v664_v47  ;;  %v1907_v38 = vshll.u32 %v518_v57, 16  ;;  %v1934_v51 = vshll.u32 %v608_v41, 16  ;;  %v1942_v63 = vshll.u32 %v638_v53, 16  ;;  %v1949_v7 = vshll.u32 %v683_v10, 16 }
 0x228   :  { %v1957_v23 = vshll.u32 %v668_v4, 16  ;;  %v1426_v34 = vmov 0.0   ;;  %v992_v2 = vsub.s32 %v1947_v5, %v1892_v42  ;;  %v1964_v47 = vadd.s32 4294967224, %v1642_v29 }
 0x229   :  { %v985_v57 = vsub.s32 %v1955_v18, %v1892_v42  ;;  %vm1001_vm5 = vcmask 589312  }
 0x297   :  { %v471_v58 = vpop.xlane.xlu1 %470 }
 0x298   :  { %v472_v59 = vcvt.f32.s32 %v471_v58  ;;  %v456_v12 = vpop.xlane.xlu0 %455 }
 0x299   :  { %v457_v20 = vcvt.f32.s32 %v456_v12 }
 0x29a   :  { %v475_v43 = vadd.s32 %v474_v19, %v472_v59 }
 0x29b   :  { %v460_v11 = vadd.s32 %v459_v52, %v457_v20  ;;  %v501_v14 = vpop.xlane.xlu1 %500 }
 0x29c   :  { %vm687_vm9 = vcmp.eq.s32.totalorder %v1642_v29, %v475_v43  ;;  %v951_v55 = vrot.slane %v475_v43, %v950_v50  ;;  %v502_v35 = vcvt.f32.s32 %v501_v14  ;;  %v486_v13 = vpop.xlane.xlu0 %485  ;;  %v1006_v50 = vsub.s32 %v1964_v47, %v1892_v42 }
 0x29d   :  { %v946_v39 = vrot.slane %v460_v11, %v945_v1  ;;  %v487_v26 = vcvt.f32.s32 %v486_v13  ;;  %vm686_vm11 = vcmp.eq.s32.totalorder %v1642_v29, %v460_v11  ;;  %v1178_v24 = vsel %vm687_vm9, 1.0, %v1426_v34 }
 0x29e   :  { %v505_v30 = vadd.s32 %v504_v28, %v502_v35  ;;  %v1177_v21 = vsel %vm686_vm11, 1.0, %v1426_v34  ;;  %v1020_v43 = vsub.s32 %v1987_v61, %v1892_v42 }
 0x29f   :  { %v953_v49 = vsel %vm952_vm6, %v951_v55, %v946_v39  ;;  %v490_v8 = vadd.s32 %v489_v36, %v487_v26  ;;  %v531_v46 = vpop.xlane.xlu1 %530  ;;  %1301 = vmatprep.mubr.msk.f32.mxu0 %vm363_vm1, %v1177_v21  ;;  %v1024_v39 = vadd.s32 4294967200, %v1642_v29 }
 0x2a0   :  { %v532_v56 = vcvt.f32.s32 %v531_v46  ;;  %1302 = vmatmul.mubr.msk.f32.vlgmr.msra.gmra.mrb[16].mxu0 %vm363_vm1, %v1178_v24  ;;  %v516_v33 = vpop.xlane.xlu0 %515  ;;  %vm689_vm13 = vcmp.eq.s32.totalorder %v1642_v29, %v505_v30  ;;  %v965_v19 = vrot.slane %v505_v30, %v964_v22 }
 0x2a1   :  { %v958_v45 = vrot.slane %v490_v8, %v957_v0  ;;  %v517_v6 = vcvt.f32.s32 %v516_v33  ;;  %vm688_vm15 = vcmp.eq.s32.totalorder %v1642_v29, %v490_v8  ;;  %v1180_v41 = vsel %vm689_vm13, 1.0, %v1426_v34 }
 0x2a2   :  { %v535_v52 = vadd.s32 %v1904_v16, %v532_v56  ;;  %v1179_v27 = vsel %vm688_vm15, 1.0, %v1426_v34  ;;  %v1010_v0 = vadd.s32 4294967216, %v1642_v29  ;;  %vm1029_vm15 = vcmask 851712  }
 0x2a3   :  { %v960_v28 = vsel %vm959_vm7, %v958_v45, %v953_v49  ;;  %v520_v36 = vadd.s32 %v1907_v38, %v517_v6  ;;  %v561_v32 = vpop.xlane.xlu1 %560  ;;  %1304 = vmatprep.mubr.msk.f32.mxu1 %vm363_vm1, %v1179_v27  ;;  %v999_v38 = vsub.s32 %v996_v15, %v1892_v42  ;;  %v1027_v45 = vsub.s32 %v1024_v39, %v1892_v42  ;;  %v1365_v39 = vld [vmem:[%s2208_s0 + $0x10] sm:$0xff] }
 0x2a4   :  { %v967_v54 = vsel %vm966_vm8, %v965_v19, %v960_v28  ;;  %v562_v44 = vcvt.f32.s32 %v561_v32  ;;  %1305 = vmatmul.mubr.msk.f32.vlgmr.msra.gmra.mrb[0].mxu1 %vm363_vm1, %v1180_v41  ;;  %v546_v16 = vpop.xlane.xlu0 %545  ;;  %vm691_vm3 = vcmp.eq.s32.totalorder %v1642_v29, %v535_v52  ;;  %v979_v25 = vrot.slane %v535_v52, %v978_v60 }
 0x2a5   :  { %v972_v53 = vrot.slane %v520_v36, %v971_v37  ;;  %v547_v1 = vcvt.f32.s32 %v546_v16  ;;  %vm690_vm4 = vcmp.eq.s32.totalorder %v1642_v29, %v520_v36  ;;  %v1182_v22 = vsel %vm691_vm3, 1.0, %v1426_v34 }
 0x2a6   :  { %v565_v10 = vadd.s32 %v1914_v17, %v562_v44  ;;  %v1181_v58 = vsel %vm690_vm4, 1.0, %v1426_v34  ;;  %vm1008_vm8 = vcmask 654912   ;;  %v1031_v37 = vadd.s32 4294967192, %v1642_v29 }
 0x2a7   :  { %v974_v9 = vsel %vm973_vm10, %v972_v53, %v967_v54  ;;  %v550_v59 = vadd.s32 %v1916_v62, %v547_v1  ;;  %v591_v12 = vpop.xlane.xlu1 %590  ;;  %1307 = vmatprep.mubr.msk.f32.mxu1 %vm363_vm1, %v1181_v58  ;;  %vm1015_vm10 = vcmask 720512   ;;  %v1038_v19 = vadd.s32 4294967184, %v1642_v29 }
 0x2a8   :  { %v981_v4 = vsel %vm980_vm12, %v979_v25, %v974_v9  ;;  %v592_v20 = vcvt.f32.s32 %v591_v12  ;;  %1308 = vmatmul.mubr.msk.f32.gmra.mrb[2].mxu1 %vm363_vm1, %v1182_v22  ;;  %v576_v17 = vpop.xlane.xlu0 %575  ;;  %vm693_vm6 = vcmp.eq.s32.totalorder %v1642_v29, %v565_v10  ;;  %v993_v5 = vrot.slane %v565_v10, %v992_v2 }
 0x2a9   :  { %v986_v60 = vrot.slane %v550_v59, %v985_v57  ;;  %v577_v62 = vcvt.f32.s32 %v576_v17  ;;  %vm692_vm7 = vcmp.eq.s32.totalorder %v1642_v29, %v550_v59  ;;  %v1184_v18 = vsel %vm693_vm6, 1.0, %v1426_v34 }
 0x2aa   :  { %v595_v11 = vadd.s32 %v1918_v48, %v592_v20  ;;  %v1183_v14 = vsel %vm692_vm7, 1.0, %v1426_v34  ;;  %v1013_v48 = vsub.s32 %v1010_v0, %v1892_v42  ;;  %v1034_v49 = vsub.s32 %v1031_v37, %v1892_v42 }
 0x2ab   :  { %v988_v55 = vsel %vm987_vm14, %v986_v60, %v981_v4  ;;  %v580_v35 = vadd.s32 %v1921_v40, %v577_v62  ;;  %v621_v13 = vpop.xlane.xlu1 %620  ;;  %1310 = vmatprep.mubr.msk.f32.mxu1 %vm363_vm1, %v1183_v14  ;;  %vm1022_vm14 = vcmask 786112   ;;  %v1045_v28 = vadd.s32 4294967176, %v1642_v29 }
 0x2ac   :  { %v995_v26 = vsel %vm994_vm2, %v993_v5, %v988_v55  ;;  %v622_v30 = vcvt.f32.s32 %v621_v13  ;;  %1311 = vmatmul.mubr.msk.f32.gmra.mrb[4].mxu1 %vm363_vm1, %v1184_v18  ;;  %v606_v21 = vpop.xlane.xlu0 %605  ;;  %vm695_vm9 = vcmp.eq.s32.totalorder %v1642_v29, %v595_v11  ;;  %v1007_v47 = vrot.slane %v595_v11, %v1006_v50  ;;  %v1364_v55 = vld [vmem:[%s2208_s0 + $0x18] sm:$0xff] }
 0x2ad   :  { %v1000_v2 = vrot.slane %v580_v35, %v999_v38  ;;  %v607_v40 = vcvt.f32.s32 %v606_v21  ;;  %vm694_vm11 = vcmp.eq.s32.totalorder %v1642_v29, %v580_v35  ;;  %v1186_v57 = vsel %vm695_vm9, 1.0, %v1426_v34 }
 0x2ae   :  { %v625_v24 = vadd.s32 %v1929_v31, %v622_v30  ;;  %v1185_v8 = vsel %vm694_vm11, 1.0, %v1426_v34  ;;  %v1041_v61 = vsub.s32 %v1038_v19, %v1892_v42  ;;  %vm1036_vm4 = vcmask 917312  }
 0x2af   :  { %v1002_v46 = vsel %vm1001_vm5, %v1000_v2, %v995_v26  ;;  %v610_v56 = vadd.s32 %v1934_v51, %v607_v40  ;;  %v651_v33 = vpop.xlane.xlu1 %650  ;;  %1313 = vmatprep.mubr.msk.f32.mxu1 %vm363_vm1, %v1185_v8  ;;  %v1048_v25 = vsub.s32 %v1045_v28, %v1892_v42  ;;  %vm1043_vm6 = vcmask 982912   ;;  %v1366_v40 = vld [vmem:[%s2208_s0 + $0x28] sm:$0xff]  ;;  %v1367_v8 = vld [vmem:[%s2208_s0 + $0x20] sm:$0xff] }
 0x2b0   :  { %v1009_v6 = vsel %vm1008_vm8, %v1007_v47, %v1002_v46  ;;  %v652_v15 = vcvt.f32.s32 %v651_v33  ;;  %1314 = vmatmul.mubr.msk.f32.gmra.mrb[6].mxu1 %vm363_vm1, %v1186_v57  ;;  %v636_v31 = vpop.xlane.xlu0 %635  ;;  %vm697_vm12 = vcmp.eq.s32.totalorder %v1642_v29, %v625_v24  ;;  %v1021_v51 = vrot.slane %v625_v24, %v1020_v43 }
 0x2b1   :  { %v1014_v52 = vrot.slane %v610_v56, %v1013_v48  ;;  %v637_v27 = vcvt.f32.s32 %v636_v31  ;;  %vm696_vm13 = vcmp.eq.s32.totalorder %v1642_v29, %v610_v56  ;;  %v1188_v44 = vsel %vm697_vm12, 1.0, %v1426_v34  ;;  %v1368_v31 = vld [vmem:[%s2208_s0 + $0x38] sm:$0xff] }
 0x2b2   :  { %v655_v50 = vadd.s32 %v1939_v3, %v652_v15  ;;  %v1187_v36 = vsel %vm696_vm13, 1.0, %v1426_v34  ;;  %vm1050_vm8 = vcmask 1048512  }
 0x2b3   :  { %v1016_v32 = vsel %vm1015_vm10, %v1014_v52, %v1009_v6  ;;  %v640_v41 = vadd.s32 %v1942_v63, %v637_v27  ;;  %v681_v54 = vpop.xlane.xlu1 %680  ;;  %1316 = vmatprep.mubr.msk.f32.mxu1 %vm363_vm1, %v1187_v36 }
 0x2b4   :  { %v682_v16 = vcvt.f32.s32 %v681_v54  ;;  %1317 = vmatmul.mubr.msk.f32.gmra.mrb[8].mxu1 %vm363_vm1, %v1188_v44  ;;  %v666_v3 = vpop.xlane.xlu0 %665  ;;  %vm699_vm2 = vcmp.eq.s32.totalorder %v1642_v29, %v655_v50  ;;  %v1023_v53 = vsel %vm1022_vm14, %v1021_v51, %v1016_v32  ;;  %v1035_v63 = vrot.slane %v655_v50, %v1034_v49  ;;  %v1369_v51 = vld [vmem:[%s2208_s0 + $0x30] sm:$0xff] }
 0x2b5   :  { %v1028_v1 = vrot.slane %v640_v41, %v1027_v45  ;;  %v667_v38 = vcvt.f32.s32 %v666_v3  ;;  %vm698_vm3 = vcmp.eq.s32.totalorder %v1642_v29, %v640_v41  ;;  %v1190_v59 = vsel %vm699_vm2, 1.0, %v1426_v34 }
 0x2b6   :  { %v685_v10 = vadd.s32 %v1949_v7, %v682_v16  ;;  %v1189_v58 = vsel %vm698_vm3, 1.0, %v1426_v34  ;;  %v1370_v16 = vld [vmem:[%s2208_s0 + $0x48] sm:$0xff] }
 0x2b7   :  { %v670_v9 = vadd.s32 %v1957_v23, %v667_v38  ;;  %1319 = vmatprep.mubr.msk.f32.mxu1 %vm363_vm1, %v1189_v58  ;;  %v1030_v12 = vsel %vm1029_vm15, %v1028_v1, %v1023_v53  ;;  %v1371_v1 = vld [vmem:[%s2208_s0 + $0x40] sm:$0xff] }
 0x2b8   :  { %vm701_vm5 = vcmp.eq.s32.totalorder %v1642_v29, %v685_v10  ;;  %1320 = vmatmul.mubr.msk.f32.gmra.mrb[10].mxu1 %vm363_vm1, %v1190_v59  ;;  %v1037_v22 = vsel %vm1036_vm4, %v1035_v63, %v1030_v12  ;;  %v1049_v42 = vrot.slane %v685_v10, %v1048_v25  ;;  %v1372_v12 = vld [vmem:[%s2208_s0 + $0x58] sm:$0xff] }
 0x2b9   :  { %v1042_v0 = vrot.slane %v670_v9, %v1041_v61  ;;  %vm700_vm7 = vcmp.eq.s32.totalorder %v1642_v29, %v670_v9  ;;  %v1192_v23 = vsel %vm701_vm5, 1.0, %v1426_v34  ;;  %v1362_v29 = vld [vmem:[%s2208_s0 + $0x8] sm:$0xff] }
 0x2ba   :  { %v1191_v7 = vsel %vm700_vm7, 1.0, %v1426_v34  ;;  %v1363_v34 = vld [vmem:[%s2208_s0] sm:$0xff] }
 0x2bb   :  { %1322 = vmatprep.mubr.msk.f32.mxu1 %vm363_vm1, %v1191_v7  ;;  %v1044_v4 = vsel %vm1043_vm6, %v1042_v0, %v1037_v22  ;;  %v1373_v7 = vld [vmem:[%s2208_s0 + $0x50] sm:$0xff] }
 0x2bc   :  { %1323 = vmatmul.mubr.msk.f32.gmra.mrb[12].mxu1 %vm363_vm1, %v1192_v23  ;;  %v1051_v20 = vsel %vm1050_vm8, %v1049_v42, %v1044_v4 }
 0x2bd   :  { %1052 = vst [vmem:[#allocation2] sm:$0x1] %v1051_v20 }
 0x373   :  { %v1303_v17 = vpop.f32.mrb[16].mxu0 }
 0x374   :  { %928 = vst.msk [vmem:[%s2212_s4 + $0x8] sm:$0xff] %vm67_vm0, %v1303_v17  ;;  %v1054_v43 = vsub.f32 %v1303_v17, %v1362_v29  ;;  %v848_v60 = vpop.f32.mrb[17].mxu0 }
 0x375   :  { %927 = vst.msk [vmem:[%s2212_s4] sm:$0xff] %vm67_vm0, %v848_v60  ;;  %v1053_v62 = vsub.f32 %v848_v60, %v1363_v34  ;;  %v1374_v34 = vld [vmem:[%s2208_s0 + $0x68] sm:$0xff] }
 0x376   :  { %v1070_v5 = vmul.f32 %v1054_v43, %v1054_v43 }
 0x377   :  { %v1069_v11 = vmul.f32 %v1053_v62, %v1053_v62  ;;  %v1306_v14 = vpop.f32.mrb[0].mxu1 }
 0x378   :  { %v1086_v37 = vsel %vm67_vm0, %v1070_v5, 0.0  ;;  %930 = vst.msk [vmem:[%s2212_s4 + $0x18] sm:$0xff] %vm67_vm0, %v1306_v14  ;;  %v1056_v35 = vsub.f32 %v1306_v14, %v1364_v55  ;;  %v858_v13 = vpop.f32.mrb[1].mxu1  ;;  %v1375_v14 = vld [vmem:[%s2208_s0 + $0x60] sm:$0xff] }
 0x379   :  { %v1085_v18 = vsel %vm67_vm0, %v1069_v11, 0.0  ;;  %929 = vst.msk [vmem:[%s2212_s4 + $0x10] sm:$0xff] %vm67_vm0, %v858_v13  ;;  %v1055_v26 = vsub.f32 %v858_v13, %v1365_v39 }
 0x37a   :  { %v1087_v30 = vadd.f32 %v1086_v37, %v1085_v18  ;;  %v1072_v48 = vmul.f32 %v1056_v35, %v1056_v35 }
 0x37b   :  { %v1071_v21 = vmul.f32 %v1055_v26, %v1055_v26  ;;  %v1309_v2 = vpop.f32.mrb[2].mxu1 }
 0x37c   :  { %932 = vst.msk [vmem:[%s2212_s4 + $0x28] sm:$0xff] %vm67_vm0, %v1309_v2  ;;  %v1058_v47 = vsub.f32 %v1309_v2, %v1366_v40  ;;  %v868_v24 = vpop.f32.mrb[3].mxu1  ;;  %v1090_v33 = vsel %vm67_vm0, %v1072_v48, 0.0  ;;  %v1377_v40 = vld [vmem:[%s2208_s0 + $0x70] sm:$0xff] }
 0x37d   :  { %v1088_v49 = vsel %vm67_vm0, %v1071_v21, 0.0  ;;  %931 = vst.msk [vmem:[%s2212_s4 + $0x20] sm:$0xff] %vm67_vm0, %v868_v24  ;;  %v1057_v46 = vsub.f32 %v868_v24, %v1367_v8 }
 0x37e   :  { %v1089_v56 = vadd.f32 %v1088_v49, %v1087_v30  ;;  %v1074_v57 = vmul.f32 %v1058_v47, %v1058_v47  ;;  %v1376_v30 = vld [vmem:[%s2208_s0 + $0x78] sm:$0xff] }
 0x37f   :  { %v1073_v45 = vmul.f32 %v1057_v46, %v1057_v46  ;;  %v1312_v6 = vpop.f32.mrb[4].mxu1 }
 0x380   :  { %v1091_v15 = vadd.f32 %v1090_v33, %v1089_v56  ;;  %934 = vst.msk [vmem:[%s2212_s4 + $0x38] sm:$0xff] %vm67_vm0, %v1312_v6  ;;  %v1060_v19 = vsub.f32 %v1312_v6, %v1368_v31  ;;  %v878_v52 = vpop.f32.mrb[5].mxu1  ;;  %v1094_v36 = vsel %vm67_vm0, %v1074_v57, 0.0 }
 0x381   :  { %v1092_v27 = vsel %vm67_vm0, %v1073_v45, 0.0  ;;  %933 = vst.msk [vmem:[%s2212_s4 + $0x30] sm:$0xff] %vm67_vm0, %v878_v52  ;;  %v1059_v50 = vsub.f32 %v878_v52, %v1369_v51 }
 0x382   :  { %v1093_v28 = vadd.f32 %v1092_v27, %v1091_v15  ;;  %v1076_v32 = vmul.f32 %v1060_v19, %v1060_v19 }
 0x383   :  { %v1075_v41 = vmul.f32 %v1059_v50, %v1059_v50  ;;  %v1315_v54 = vpop.f32.mrb[6].mxu1 }
 0x384   :  { %v1095_v44 = vadd.f32 %v1094_v36, %v1093_v28  ;;  %936 = vst.msk [vmem:[%s2212_s4 + $0x48] sm:$0xff] %vm67_vm0, %v1315_v54  ;;  %v1062_v61 = vsub.f32 %v1315_v54, %v1370_v16  ;;  %v888_v3 = vpop.f32.mrb[7].mxu1  ;;  %v1098_v25 = vsel %vm67_vm0, %v1076_v32, 0.0 }
 0x385   :  { %v1096_v53 = vsel %vm67_vm0, %v1075_v41, 0.0  ;;  %935 = vst.msk [vmem:[%s2212_s4 + $0x40] sm:$0xff] %vm67_vm0, %v888_v3  ;;  %v1061_v38 = vsub.f32 %v888_v3, %v1371_v1 }
 0x386   :  { %v1097_v63 = vadd.f32 %v1096_v53, %v1095_v44  ;;  %v1078_v10 = vmul.f32 %v1062_v61, %v1062_v61 }
 0x387   :  { %v1077_v58 = vmul.f32 %v1061_v38, %v1061_v38  ;;  %v1318_v9 = vpop.f32.mrb[8].mxu1 }
 0x388   :  { %v1099_v59 = vadd.f32 %v1098_v25, %v1097_v63  ;;  %938 = vst.msk [vmem:[%s2212_s4 + $0x58] sm:$0xff] %vm67_vm0, %v1318_v9  ;;  %v1064_v22 = vsub.f32 %v1318_v9, %v1372_v12  ;;  %v898_v0 = vpop.f32.mrb[9].mxu1  ;;  %v1102_v20 = vsel %vm67_vm0, %v1078_v10, 0.0 }
 0x389   :  { %v1100_v42 = vsel %vm67_vm0, %v1077_v58, 0.0  ;;  %937 = vst.msk [vmem:[%s2212_s4 + $0x50] sm:$0xff] %vm67_vm0, %v898_v0  ;;  %v1063_v23 = vsub.f32 %v898_v0, %v1373_v7 }
 0x38a   :  { %v1101_v4 = vadd.f32 %v1100_v42, %v1099_v59  ;;  %v1080_v17 = vmul.f32 %v1064_v22, %v1064_v22 }
 0x38b   :  { %v1079_v29 = vmul.f32 %v1063_v23, %v1063_v23  ;;  %v1321_v43 = vpop.f32.mrb[10].mxu1 }
 0x38c   :  { %v1103_v60 = vadd.f32 %v1102_v20, %v1101_v4  ;;  %940 = vst.msk [vmem:[%s2212_s4 + $0x68] sm:$0xff] %vm67_vm0, %v1321_v43  ;;  %v1066_v62 = vsub.f32 %v1321_v43, %v1374_v34  ;;  %v908_v5 = vpop.f32.mrb[11].mxu1  ;;  %v1106_v35 = vsel %vm67_vm0, %v1080_v17, 0.0 }
 0x38d   :  { %v1104_v11 = vsel %vm67_vm0, %v1079_v29, 0.0  ;;  %939 = vst.msk [vmem:[%s2212_s4 + $0x60] sm:$0xff] %vm67_vm0, %v908_v5  ;;  %v1065_v37 = vsub.f32 %v908_v5, %v1375_v14 }
 0x38e   :  { %v1105_v55 = vadd.f32 %v1104_v11, %v1103_v60  ;;  %v1082_v13 = vmul.f32 %v1066_v62, %v1066_v62 }
 0x38f   :  { %v1081_v18 = vmul.f32 %v1065_v37, %v1065_v37  ;;  %v1324_v39 = vpop.f32.mrb[12].mxu1 }
 0x390   :  { %v1107_v26 = vadd.f32 %v1106_v35, %v1105_v55  ;;  %942 = vst.msk [vmem:[%s2212_s4 + $0x78] sm:$0xff] %vm67_vm0, %v1324_v39  ;;  %v1068_v48 = vsub.f32 %v1324_v39, %v1376_v30  ;;  %v918_v21 = vpop.f32.mrb[13].mxu1  ;;  %v1110_v49 = vsel %vm67_vm0, %v1082_v13, 0.0 }
 0x391   :  { %v1108_v2 = vsel %vm67_vm0, %v1081_v18, 0.0  ;;  %941 = vst.msk [vmem:[%s2212_s4 + $0x70] sm:$0xff] %vm67_vm0, %v918_v21  ;;  %v1067_v47 = vsub.f32 %v918_v21, %v1377_v40  ;;  %s1136_s4 = sshll.u32 %s1427_s1, 4  ;;  %s1137_s4 = int_to_ptr.vmem [resolvable:$true] %s1136_s4 }
 0x392   :  { %v1109_v24 = vadd.f32 %v1108_v2, %v1107_v26  ;;  %v1084_v8 = vmul.f32 %v1068_v48, %v1068_v48  ;;  %s1378_s3 = scalar_lea.vmem %s1137_s4, 16  ;;  %s1382_s0 = scalar_lea.vmem %s1137_s4, 32 }
 0x393   :  { %v1083_v46 = vmul.f32 %v1067_v47, %v1067_v47  ;;  %p1379_p0 = scmp.ne.s32.totalorder %s1137_s4, %s1378_s3  ;;  %p1383_p1 = scmp.lt.s32.totalorder %s1137_s4, %s1137_s4 }
 0x394   :  { %v1111_v56 = vadd.f32 %v1110_v49, %v1109_v24  ;;  %v1114_v45 = vsel %vm67_vm0, %v1084_v8, 0.0  ;;  %p1384_p2 = scmp.lt.s32.totalorder %s1382_s0, %s1378_s3 }
 0x395   :  { %v1112_v33 = vsel %vm67_vm0, %v1083_v46, 0.0 }
 0x396   :  { %v1113_v57 = vadd.f32 %v1112_v33, %v1111_v56  ;;  %p1385_p3 = por %p1384_p2, %p1383_p1 }
 0x398   :  { %v1115_v6 = vadd.f32 %v1114_v45, %v1113_v57  ;;  %p1386_p4 = pnand %p1385_p3, %p1379_p0 }
 0x39a   :  { %1116 = vadd.xlane.f32.xlu0 %v1115_v6 }
 0x39b   :  { %1389 = shalt.err (!%p1386_p4)
}
 0x39c   :  { %s1390_s15 = scalar_lea.hbm %s2213_s5, 16 }
 0x39d   :  { %p1391_p5 = scmp.ne.s32.totalorder %s2213_s5, %s1390_s15  ;;  %p1394_p6 = scmp.lt.u32.totalorder %s1390_s15, %s2213_s5 }
 0x39f   :  { %p1396_p7 = pnand %p1394_p6, %p1391_p5 }
 0x3a1   :  { %1399 = shalt.err (!%p1396_p7)
}
 0x3a2   :  { %1139 = dma.vmem_to_hbm [thread:$0]  %s1137_s4, 16, %s2213_s5, [#allocation3]   ;;  %vm1126_vm0 = vcmask 0  }
 0x3a3   :  { %s1428_s22 = smov [#allocation4]  }
 0x3a4   :  { %s1146_s23 = sshll.u32 %s1428_s22, 4  ;;  %s1147_s23 = int_to_ptr.vmem [resolvable:$true] %s1146_s23 }
 0x3a5   :  { %s1400_s25 = scalar_lea.vmem %s1147_s23, 16  ;;  %s1404_s26 = scalar_lea.vmem %s1147_s23, 32 }
 0x3a6   :  { %p1401_p8 = scmp.ne.s32.totalorder %s1147_s23, %s1400_s25  ;;  %p1405_p9 = scmp.lt.s32.totalorder %s1147_s23, %s1147_s23 }
 0x3a7   :  { %p1406_p10 = scmp.lt.s32.totalorder %s1404_s26, %s1400_s25 }
 0x3a9   :  { %p1407_p11 = por %p1406_p10, %p1405_p9 }
 0x3ab   :  { %p1408_p12 = pnand %p1407_p11, %p1401_p8 }
 0x427   :  { %v1117_v15 = vpop.xlane.xlu0 %1116 }
 0x428   :  { %v1118_v31 = vrot.slane %v1117_v15, 4 }
 0x42a   :  { %v1119_v19 = vadd.f32 %v1118_v31, %v1117_v15 }
 0x42c   :  { %v1120_v52 = vrot.slane %v1119_v19, 2 }
 0x42e   :  { %v1121_v27 = vadd.f32 %v1120_v52, %v1119_v19 }
 0x430   :  { %v1122_v51 = vrot.slane %v1121_v27, 1 }
 0x432   :  { %v1123_v50 = vadd.f32 %v1122_v51, %v1121_v27 }
 0x434   :  { %1357 = vpush %v1123_v50 }
 0x465   :  { %s1358_s24 = spop %1357 }
 0x466   :  { %v1125_v28 = vstv %s1358_s24 }
 0x467   :  { %1127 = vst.msk [vmem:[#allocation4] sm:$0x1] %vm1126_vm0, %v1125_v28 }
 0x468   :  { %1411 = shalt.err (!%p1408_p12)
}
 0x469   :  { %s1412_s2 = scalar_lea.hbm %s2214_s6, 16 }
 0x46a   :  { %p1413_p13 = scmp.ne.s32.totalorder %s2214_s6, %s1412_s2  ;;  %p1416_p0 = scmp.lt.u32.totalorder %s1412_s2, %s2214_s6 }
 0x46c   :  { %p1418_p1 = pnand %p1416_p0, %p1413_p13 }
 0x46e   :  { %1421 = shalt.err (!%p1418_p1)
}
 0x46f   :  { %1149 = dma.vmem_to_hbm [thread:$0]  %s1147_s23, 16, %s2214_s6, [#allocation5]  }
 0x470   :  { %1422 = dma.done.wait [#allocation3], 16  }
 0x471   :  { %1423 = vsyncadd [#allocation3], 4294967280 }
 0x472   :  { %1424 = dma.done.wait [#allocation5], 16  }
 0x473   :  { %1425 = vsyncadd [#allocation5], 4294967280 }
 0x474   :  { %1158 = vsyncpa [#allocation3], 1 }
 0x475   :  { %1159 = vsyncpa [#allocation5], 1 }

</bundles_post_ra>
